<compile_context>
chip_gen: v6e
topology: v6e:2x2x1
jax: 0.10.0
libtpu: 0.0.40
codegen_flags: <defaults>
</compile_context>

<pallas_src>
import jax
import jax.numpy as jnp
import numpy as np
from jax import lax
from jax.experimental import pallas as pl
from jax.experimental.pallas import tpu as pltpu


def _round_up(n, m):
    return ((n + m - 1) // m) * m


def _pick_tile(hw, desired):
    """Pick a tile size from {512, 256, 128} (mutually divisible, lane aligned)."""
    hw128 = _round_up(hw, 128)
    for t in (512, 256, 128):
        if t <= desired and t <= hw128:
            return t
    return 128


# ----------------------------- Stage 1: fused projections -----------------------------

def _make_proj_kernel(cq_pad):
    def kernel(x_ref, w_ref, b_ref, qn_ref, kn_ref, v_ref):
        # bf16 MXU operands, f32 accumulation.
        xt = x_ref[0].astype(jnp.bfloat16)                                  # (TP, C_pad)
        qkv = jnp.dot(xt, w_ref[...],
                      preferred_element_type=jnp.float32) + b_ref[...]      # (TP, 2Cq+C)
        q = qkv[:, :cq_pad]
        k = qkv[:, cq_pad:2 * cq_pad]
        v = qkv[:, 2 * cq_pad:]
        # clamp(||.||, 1e-6) == rsqrt(max(||.||^2, 1e-12)); rsqrt -> EUP slot.
        q_inv = lax.rsqrt(jnp.maximum(jnp.sum(q * q, axis=-1, keepdims=True), 1e-12))
        k_inv = lax.rsqrt(jnp.maximum(jnp.sum(k * k, axis=-1, keepdims=True), 1e-12))
        qn_ref[0] = (q * q_inv).astype(jnp.bfloat16)
        kn_ref[0] = (k * k_inv).astype(jnp.bfloat16)
        v_ref[0] = v.astype(jnp.bfloat16)
    return kernel


# ----------------------------- Stage 2: flash attention -------------------------------

def _make_attn_kernel(hw, hw_pad, tk):
    mask_needed = hw_pad != hw

    def kernel(qn_ref, kn_ref, v_ref, xq_ref, gamma_ref, o_ref, m_sc, l_sc, acc_sc):
        ki = pl.program_id(2)
        nk = pl.num_programs(2)

        @pl.when(ki == 0)
        def _init():
            m_sc[...] = jnp.full_like(m_sc, -jnp.inf)
            l_sc[...] = jnp.zeros_like(l_sc)
            acc_sc[...] = jnp.zeros_like(acc_sc)

        # scores: contract channel axes directly (bf16 operands, f32 accumulation).
        s = lax.dot_general(qn_ref[0], kn_ref[0], (((1,), (1,)), ((), ())),
                            preferred_element_type=jnp.float32)             # (TQ, TK)
        if mask_needed:
            key_idx = ki * tk + lax.broadcasted_iota(jnp.int32, s.shape, 1)
            s = jnp.where(key_idx < hw, s, -jnp.inf)

        # --- online softmax update (m / l / acc stay f32) ---
        m_prev = m_sc[...]
        m_new = jnp.maximum(m_prev, jnp.max(s, axis=-1, keepdims=True))
        alpha = jnp.exp(m_prev - m_new)
        p = jnp.exp(s - m_new)
        l_sc[...] = alpha * l_sc[...] + jnp.sum(p, axis=-1, keepdims=True)
        acc_sc[...] = alpha * acc_sc[...] + jnp.dot(
            p.astype(jnp.bfloat16), v_ref[0], preferred_element_type=jnp.float32)
        m_sc[...] = m_new

        @pl.when(ki == nk - 1)
        def _finalize():
            inv_l = pl.reciprocal(l_sc[...], approx=True)                    # EUP vrcp
            o_ref[0] = gamma_ref[0] * (acc_sc[...] * inv_l) + xq_ref[0]

    return kernel


# --------------------------------------- wrapper ---------------------------------------

def normed_pam_forward(x, wq, bq, wk, bk, wv, bv, gamma, *, tq=512, tk=512):
    """x: (B, C, H, W) float32. Conv weights in PyTorch 1x1-conv layout (Cout, Cin, 1, 1)."""
    B, C, H, W = x.shape
    HW = H * W
    Cq = wq.shape[0]

    LANE = 128
    C_pad = _round_up(C, LANE)
    Cq_pad = _round_up(Cq, LANE)

    TQ = _pick_tile(HW, tq)
    TK = _pick_tile(HW, tk)
    TP = max(TQ, TK)
    HW_pad = _round_up(HW, TP)            # both TQ and TK divide TP (all in {128,256,512})
    assert HW_pad % TQ == 0 and HW_pad % TK == 0
    n_q = HW_pad // TQ
    n_k = HW_pad // TK

    VMEM_LIMIT = 32 * 1024 * 1024         # raise v5e's 16 MiB default; safe on v6e/v7x

    # NCHW -> (B, HW_pad, C_pad): channel-last so 1x1 convs become row matmuls and the
    # kernel lane axis is dense.  Zero padding is inert (masked keys / sliced outputs).
    x_flat = jnp.transpose(x.reshape(B, C, HW), (0, 2, 1))
    x_flat = jnp.pad(x_flat, ((0, 0), (0, HW_pad - HW), (0, C_pad - C)))

    def prep_w(w, cout_pad):
        cout = w.shape[0]
        wm = w.reshape(cout, C).T                                            # (C, Cout)
        return jnp.pad(wm, ((0, C_pad - C), (0, cout_pad - cout)))

    def prep_b(b, cout_pad):
        return jnp.pad(b, (0, cout_pad - b.shape[0]))

    # One fused [q | k | v] weight matrix (bf16 operands for the MXU, f32 bias).
    w_qkv = jnp.concatenate([prep_w(wq, Cq_pad), prep_w(wk, Cq_pad), prep_w(wv, C_pad)],
                            axis=1).astype(jnp.bfloat16)                     # (C_pad, 2Cq+C)
    b_qkv = jnp.concatenate([prep_b(bq, Cq_pad), prep_b(bk, Cq_pad), prep_b(bv, C_pad)]
                            ).reshape(1, -1).astype(jnp.float32)
    N_qkv = 2 * Cq_pad + C_pad

    gamma_m = gamma.reshape(1).astype(jnp.float32)

    # ---- Stage 1: project q/k/v ONCE per batch element, store bf16 in HBM ----
    qn, kn, v = pl.pallas_call(
        _make_proj_kernel(Cq_pad),
        out_shape=(jax.ShapeDtypeStruct((B, HW_pad, Cq_pad), jnp.bfloat16),
                   jax.ShapeDtypeStruct((B, HW_pad, Cq_pad), jnp.bfloat16),
                   jax.ShapeDtypeStruct((B, HW_pad, C_pad), jnp.bfloat16)),
        grid_spec=pltpu.PrefetchScalarGridSpec(
            num_scalar_prefetch=0,
            grid=(B, HW_pad // TP),
            in_specs=[
                pl.BlockSpec((1, TP, C_pad), lambda b, i: (b, i, 0)),        # x tile
                pl.BlockSpec((C_pad, N_qkv), lambda b, i: (0, 0)),           # W[q|k|v]
                pl.BlockSpec((1, N_qkv), lambda b, i: (0, 0)),               # b[q|k|v]
            ],
            out_specs=[
                pl.BlockSpec((1, TP, Cq_pad), lambda b, i: (b, i, 0)),
                pl.BlockSpec((1, TP, Cq_pad), lambda b, i: (b, i, 0)),
                pl.BlockSpec((1, TP, C_pad), lambda b, i: (b, i, 0)),
            ],
        ),
        compiler_params=pltpu.CompilerParams(
            dimension_semantics=("parallel", "parallel"),
            vmem_limit_bytes=VMEM_LIMIT),
    )(x_flat, w_qkv, b_qkv)

    # ---- Stage 2: flash-style attention + gamma * out + residual ----
    # Note (v7x): B * n_q is the parallel extent sharded over the 2 TensorCores; keep it >= 2.
    # TODO(synk): add pipeline_mode=pl.Buffered(3) on the kn/v specs if profiling shows exposed DMA.
    out_flat = pl.pallas_call(
        _make_attn_kernel(HW, HW_pad, TK),
        out_shape=jax.ShapeDtypeStruct((B, HW_pad, C_pad), jnp.float32),
        grid_spec=pltpu.PrefetchScalarGridSpec(
            num_scalar_prefetch=0,
            grid=(B, n_q, n_k),
            in_specs=[
                pl.BlockSpec((1, TQ, Cq_pad), lambda b, qi, ki: (b, qi, 0)),  # qn tile
                pl.BlockSpec((1, TK, Cq_pad), lambda b, qi, ki: (b, ki, 0)),  # kn tile
                pl.BlockSpec((1, TK, C_pad), lambda b, qi, ki: (b, ki, 0)),   # v tile
                pl.BlockSpec((1, TQ, C_pad), lambda b, qi, ki: (b, qi, 0)),   # x (residual)
                pl.BlockSpec(memory_space=pltpu.MemorySpace.SMEM),            # gamma
            ],
            out_specs=pl.BlockSpec((1, TQ, C_pad), lambda b, qi, ki: (b, qi, 0)),
            scratch_shapes=[
                pltpu.VMEM((TQ, 1), jnp.float32),        # running row max
                pltpu.VMEM((TQ, 1), jnp.float32),        # running softmax denom
                pltpu.VMEM((TQ, C_pad), jnp.float32),    # output accumulator
            ],
        ),
        compiler_params=pltpu.CompilerParams(
            dimension_semantics=("parallel", "parallel", "arbitrary"),
            vmem_limit_bytes=VMEM_LIMIT),
    )(qn, kn, v, x_flat, gamma_m)

    out = out_flat[:, :HW, :C]                                               # drop padding
    return jnp.transpose(out, (0, 2, 1)).reshape(B, C, H, W)


# --------------------------------------- reference --------------------------------------

def _reference(x, wq, bq, wk, bk, wv, bv, gamma):
    """Pure-JAX f32 mirror of the PyTorch forward (verification baseline)."""
    B, C, H, W = x.shape
    HW = H * W
    Cq = wq.shape[0]
    x_f = x.reshape(B, C, HW)
    q = jnp.einsum('oc,bch->boh', wq.reshape(Cq, C), x_f) + bq[None, :, None]
    k = jnp.einsum('oc,bch->boh', wk.reshape(Cq, C), x_f) + bk[None, :, None]
    v = jnp.einsum('oc,bch->boh', wv.reshape(C, C), x_f) + bv[None, :, None]
    pq = jnp.transpose(q, (0, 2, 1))
    pq = pq / jnp.maximum(jnp.linalg.norm(pq, axis=-1, keepdims=True), 1e-6)
    k = k / jnp.maximum(jnp.linalg.norm(k, axis=1, keepdims=True), 1e-6)
    energy = jnp.einsum('bic,bcj->bij', pq, k)
    attn = jax.nn.softmax(energy, axis=-1)
    out = jnp.einsum('bcj,bij->bci', v, attn)
    return gamma[0] * out.reshape(B, C, H, W) + x


if __name__ == "__main__":
    key = jax.random.PRNGKey(0)
    kx, k1, k2, k3, k4, k5, k6, kx2 = jax.random.split(key, 8)

    C = 16                              # in_dim = 16 -> query/key channels = 2
    Cq = C // 8

    # Deterministic synthetic parameters (shapes match Conv2d(1x1) weights/biases).
    wq = 0.1 * jax.random.normal(k1, (Cq, C, 1, 1), dtype=jnp.float32)
    bq = 0.1 * jax.random.normal(k2, (Cq,), dtype=jnp.float32)
    wk = 0.1 * jax.random.normal(k3, (Cq, C, 1, 1), dtype=jnp.float32)
    bk = 0.1 * jax.random.normal(k4, (Cq,), dtype=jnp.float32)
    wv = 0.1 * jax.random.normal(k5, (C, C, 1, 1), dtype=jnp.float32)
    bv = 0.1 * jax.random.normal(k6, (C,), dtype=jnp.float32)
    # Module __init__ sets gamma = 0; use a nonzero value so the attention path
    # actually contributes to the checked output.
    gamma = jnp.array([0.5], dtype=jnp.float32)

    # Case 1: HW = 256 with 128-tiles -> exercises the multi-tile online-softmax path.
    x1 = jax.random.normal(kx, (2, C, 16, 16), dtype=jnp.float32)
    out1 = jax.block_until_ready(
        normed_pam_forward(x1, wq, bq, wk, bk, wv, bv, gamma, tq=128, tk=128))
    ref1 = _reference(x1, wq, bq, wk, bk, wv, bv, gamma)
    # bf16 MXU operands + approx EUP reciprocal -> ~1e-3-level deviation vs f32 ref.
    np.testing.assert_allclose(np.asarray(out1), np.asarray(ref1), rtol=3e-3, atol=3e-3)

    # Case 2: HW = 100 (not tile-divisible) -> exercises HW padding + key masking.
    x2 = jax.random.normal(kx2, (1, C, 10, 10), dtype=jnp.float32)
    out2 = jax.block_until_ready(
        normed_pam_forward(x2, wq, bq, wk, bk, wv, bv, gamma))
    ref2 = _reference(x2, wq, bq, wk, bk, wv, bv, gamma)
    np.testing.assert_allclose(np.asarray(out2), np.asarray(ref2), rtol=3e-3, atol=3e-3)

    print("KERNEL_OK")
</pallas_src>

<mosaic_0001>
module attributes {stable_mosaic.version = 11 : i64} {
  func.func @kernel(%arg0: i32, %arg1: i32, %arg2: memref<1x128x128xf32, #tpu.memory_space<vmem>>, %arg3: memref<128x384xbf16, #tpu.memory_space<vmem>>, %arg4: memref<1x384xf32, #tpu.memory_space<vmem>>, %arg5: memref<1x128x128xbf16, #tpu.memory_space<vmem>>, %arg6: memref<1x128x128xbf16, #tpu.memory_space<vmem>>, %arg7: memref<1x128x128xbf16, #tpu.memory_space<vmem>>) attributes {dimension_semantics = [#tpu.dimension_semantics<parallel>, #tpu.dimension_semantics<parallel>], iteration_bounds = array<i64: 2, 2>, scalar_prefetch = 0 : i64, scratch_operands = 0 : i64, tpu.core_type = #tpu.core_type<tc>, window_params = [{transform_indices = @transform_0, window_bounds = array<i64: 1, 128, 128>}, {pipeline_mode = #tpu.pipeline_mode<synchronous>, transform_indices = @transform_1, window_bounds = array<i64: 128, 384>}, {pipeline_mode = #tpu.pipeline_mode<synchronous>, transform_indices = @transform_2, window_bounds = array<i64: 1, 384>}, {transform_indices = @transform_3, window_bounds = array<i64: 1, 128, 128>}, {transform_indices = @transform_4, window_bounds = array<i64: 1, 128, 128>}, {transform_indices = @transform_5, window_bounds = array<i64: 1, 128, 128>}]} {
    %c0 = arith.constant 0 : index
    %c0_0 = arith.constant 0 : index
    %c0_1 = arith.constant 0 : index
    %0 = vector.load %arg2[%c0, %c0_0, %c0_1] : memref<1x128x128xf32, #tpu.memory_space<vmem>>, vector<1x128x128xf32>
    %1 = vector.shape_cast %0 : vector<1x128x128xf32> to vector<128x128xf32>
    %2 = arith.truncf %1 : vector<128x128xf32> to vector<128x128xbf16>
    %c0_2 = arith.constant 0 : index
    %c0_3 = arith.constant 0 : index
    %3 = vector.load %arg3[%c0_2, %c0_3] : memref<128x384xbf16, #tpu.memory_space<vmem>>, vector<128x384xbf16>
    %cst = arith.constant dense<0.000000e+00> : vector<128x384xf32>
    %4 = tpu.matmul %2, %3, %cst {dimension_numbers = #tpu.dot_dimension_numbers<[1], [0], [0], [1], [0, 0, 1, 1], [], []>} : vector<128x128xbf16>, vector<128x384xbf16>, vector<128x384xf32> -> vector<128x384xf32>
    %c0_4 = arith.constant 0 : index
    %c0_5 = arith.constant 0 : index
    %5 = vector.load %arg4[%c0_4, %c0_5] : memref<1x384xf32, #tpu.memory_space<vmem>>, vector<1x384xf32>
    %6 = vector.broadcast %5 : vector<1x384xf32> to vector<128x384xf32>
    %7 = arith.addf %4, %6 : vector<128x384xf32>
    %8 = vector.extract_strided_slice %7 {offsets = [0, 0], sizes = [128, 128], strides = [1, 1]} : vector<128x384xf32> to vector<128x128xf32>
    %9 = vector.extract_strided_slice %7 {offsets = [0, 128], sizes = [128, 128], strides = [1, 1]} : vector<128x384xf32> to vector<128x128xf32>
    %10 = vector.extract_strided_slice %7 {offsets = [0, 256], sizes = [128, 128], strides = [1, 1]} : vector<128x384xf32> to vector<128x128xf32>
    %11 = arith.mulf %8, %8 : vector<128x128xf32>
    %cst_6 = arith.constant dense<0.000000e+00> : vector<128xf32>
    %12 = vector.multi_reduction <add>, %11, %cst_6 [1] : vector<128x128xf32> to vector<128xf32>
    %13 = vector.shape_cast %12 : vector<128xf32> to vector<128x1xf32>
    %cst_7 = arith.constant 9.99999996E-13 : f32
    %14 = vector.broadcast %cst_7 : f32 to vector<128x1xf32>
    %15 = arith.maximumf %13, %14 : vector<128x1xf32>
    %16 = math.rsqrt %15 : vector<128x1xf32>
    %17 = arith.mulf %9, %9 : vector<128x128xf32>
    %cst_8 = arith.constant dense<0.000000e+00> : vector<128xf32>
    %18 = vector.multi_reduction <add>, %17, %cst_8 [1] : vector<128x128xf32> to vector<128xf32>
    %19 = vector.shape_cast %18 : vector<128xf32> to vector<128x1xf32>
    %cst_9 = arith.constant 9.99999996E-13 : f32
    %20 = vector.broadcast %cst_9 : f32 to vector<128x1xf32>
    %21 = arith.maximumf %19, %20 : vector<128x1xf32>
    %22 = math.rsqrt %21 : vector<128x1xf32>
    %23 = vector.broadcast %16 : vector<128x1xf32> to vector<128x128xf32>
    %24 = arith.mulf %8, %23 : vector<128x128xf32>
    %25 = arith.truncf %24 : vector<128x128xf32> to vector<128x128xbf16>
    %c0_10 = arith.constant 0 : index
    %c0_11 = arith.constant 0 : index
    %c0_12 = arith.constant 0 : index
    %26 = vector.load %arg5[%c0_10, %c0_11, %c0_12] : memref<1x128x128xbf16, #tpu.memory_space<vmem>>, vector<1x128x128xbf16>
    %27 = vector.shape_cast %26 : vector<1x128x128xbf16> to vector<128x128xbf16>
    %28 = vector.shape_cast %25 : vector<128x128xbf16> to vector<1x128x128xbf16>
    tpu.vector_store %arg5[%c0_10, %c0_11, %c0_12], %28 {strides = array<i32>} : memref<1x128x128xbf16, #tpu.memory_space<vmem>>, vector<1x128x128xbf16>,
    %29 = vector.broadcast %22 : vector<128x1xf32> to vector<128x128xf32>
    %30 = arith.mulf %9, %29 : vector<128x128xf32>
    %31 = arith.truncf %30 : vector<128x128xf32> to vector<128x128xbf16>
    %c0_13 = arith.constant 0 : index
    %c0_14 = arith.constant 0 : index
    %c0_15 = arith.constant 0 : index
    %32 = vector.load %arg6[%c0_13, %c0_14, %c0_15] : memref<1x128x128xbf16, #tpu.memory_space<vmem>>, vector<1x128x128xbf16>
    %33 = vector.shape_cast %32 : vector<1x128x128xbf16> to vector<128x128xbf16>
    %34 = vector.shape_cast %31 : vector<128x128xbf16> to vector<1x128x128xbf16>
    tpu.vector_store %arg6[%c0_13, %c0_14, %c0_15], %34 {strides = array<i32>} : memref<1x128x128xbf16, #tpu.memory_space<vmem>>, vector<1x128x128xbf16>,
    %35 = arith.truncf %10 : vector<128x128xf32> to vector<128x128xbf16>
    %c0_16 = arith.constant 0 : index
    %c0_17 = arith.constant 0 : index
    %c0_18 = arith.constant 0 : index
    %36 = vector.load %arg7[%c0_16, %c0_17, %c0_18] : memref<1x128x128xbf16, #tpu.memory_space<vmem>>, vector<1x128x128xbf16>
    %37 = vector.shape_cast %36 : vector<1x128x128xbf16> to vector<128x128xbf16>
    %38 = vector.shape_cast %35 : vector<128x128xbf16> to vector<1x128x128xbf16>
    tpu.vector_store %arg7[%c0_16, %c0_17, %c0_18], %38 {strides = array<i32>} : memref<1x128x128xbf16, #tpu.memory_space<vmem>>, vector<1x128x128xbf16>,
    return
  }
  func.func @transform_0(%arg0: i32, %arg1: i32) -> (i32, i32, i32) {
    %c0_i32 = arith.constant 0 : i32
    %c0_i32_0 = arith.constant 0 : i32
    return %arg0, %arg1, %c0_i32 : i32, i32, i32
  }
  func.func @transform_1(%arg0: i32, %arg1: i32) -> (i32, i32) {
    %c0_i32 = arith.constant 0 : i32
    %c0_i32_0 = arith.constant 0 : i32
    %c0_i32_1 = arith.constant 0 : i32
    return %c0_i32, %c0_i32_0 : i32, i32
  }
  func.func @transform_2(%arg0: i32, %arg1: i32) -> (i32, i32) {
    %c0_i32 = arith.constant 0 : i32
    %c0_i32_0 = arith.constant 0 : i32
    %c0_i32_1 = arith.constant 0 : i32
    return %c0_i32, %c0_i32_0 : i32, i32
  }
  func.func @transform_3(%arg0: i32, %arg1: i32) -> (i32, i32, i32) {
    %c0_i32 = arith.constant 0 : i32
    %c0_i32_0 = arith.constant 0 : i32
    return %arg0, %arg1, %c0_i32 : i32, i32, i32
  }
  func.func @transform_4(%arg0: i32, %arg1: i32) -> (i32, i32, i32) {
    %c0_i32 = arith.constant 0 : i32
    %c0_i32_0 = arith.constant 0 : i32
    return %arg0, %arg1, %c0_i32 : i32, i32, i32
  }
  func.func @transform_5(%arg0: i32, %arg1: i32) -> (i32, i32, i32) {
    %c0_i32 = arith.constant 0 : i32
    %c0_i32_0 = arith.constant 0 : i32
    return %arg0, %arg1, %c0_i32 : i32, i32, i32
  }
}

</mosaic_0001>

<bundles_post_ra>
// kernel: tpu_custom_call.1
= control target key start
LH: loop header
LB: loop body
LE: loop exit
PB: predicated region body
PF: predicated region fallthrough
CT: control target
= control target key end

     0   :  { %s2706_s0 = inlined_call_operand.hbm [shape: f32[2,256,128], index: 0, kind: input, shape index: {}]   ;;  %s2707_s1 = inlined_call_operand.hbm [shape: bf16[128,384], index: 1, kind: input, shape index: {}]   ;;  %s2708_s2 = inlined_call_operand.vmem [shape: f32[1,384], index: 2, kind: input, shape index: {}]   ;;  %s2709_s3 = inlined_call_operand.hbm [shape: bf16[2,256,128], index: 3, kind: output, shape index: {0}]   ;;  %s2710_s4 = inlined_call_operand.hbm [shape: bf16[2,256,128], index: 4, kind: output, shape index: {1}]   ;;  %s2711_s5 = inlined_call_operand.hbm [shape: bf16[2,256,128], index: 5, kind: output, shape index: {2}]  }
   0x1   :  { %2719 = sst [smem:[#allocation19_spill]] %s2707_s1 }
   0x2   :  { %2720 = sst [smem:[#allocation20_spill]] %s2709_s3 }
   0x3   :  { %2721 = sst [smem:[#allocation21_spill]] %s2711_s5 }
   0x4   :  { %11 = vsyncpa [#allocation3], 0 }
   0x5   :  { %13 = vsyncpa [#allocation3 + $0x1], 0 }
   0x6   :  { %14 = vsyncpa [#allocation6], 0 }
   0x7   :  { %15 = vsyncpa [#allocation4], 0 }
   0x8   :  { %17 = vsyncpa [#allocation4 + $0x1], 0 }
   0x9   :  { %18 = vsyncpa [#allocation9], 0 }
   0xa   :  { %20 = vsyncpa [#allocation9 + $0x1], 0  ;;  %s2169_s18 = smov 0   ;;  %s2171_s19 = smov 0  }
   0xb   :  { %s2173_s20 = smov 0   ;;  %s2175_s21 = smov 0  }
   0xc   :  { %s2177_s22 = smov 0   ;;  %s2179_s23 = smov 0  }
   0xd   :  { %s2181_s24 = smov 0   ;;  %s2183_s25 = smov 0  }
   0xe LB: > { %2722 = sst [smem:[#allocation15_spill]] %s2097_s18  ;;  %s2210_s26 = sadd.s32 4294967295, %s2125_s25   ;;  %s2125_s25 = sphi %s2183_s25, %s26_s25   ;;  %s2121_s24 = sphi %s2181_s24, %s2746_s24   ;;  %s2117_s23 = sphi %s2179_s23, %s2741_s23   ;;  %s2113_s22 = sphi %s2177_s22, %s2745_s22   ;;  %s2109_s21 = sphi %s2175_s21, %s2740_s21   ;;  %s2105_s20 = sphi %s2173_s20, %s2744_s20   ;;  %s2101_s19 = sphi %s2171_s19, %s2743_s19   ;;  %s2097_s18 = sphi %s2169_s18, %s2742_s18  }
   0xf   : > { %2723 = sst [smem:[#allocation16_spill]] %s2117_s23  ;;  %s2712_s27 = sadd.s32 4294967294, %s2125_s25  }
  0x10   : > { %p60_p0 = scmp.ne.s32.totalorder %s2101_s19, %s2097_s18  ;;  %p61_p1 = scmp.eq.s32.totalorder %s2210_s26, 0 }
  0x11   : > { %p134_p3 = scmp.eq.s32.totalorder %s2712_s27, 3  ;;  %p1377_p5 = scmp.ge.s32.totalorder %s2125_s25, 1 }
  0x12   : > { %p2221_p4 = por %p61_p1, %p60_p0  ;;  %p197_p7 = scmp.lt.s32.totalorder %s2125_s25, 5 }
  0x13   : > { %p2226_p6 = por %p134_p3, %p60_p0  ;;  %s2127_s6 = smov [#allocation5]  }
  0x14   : > { %p2231_p8 = pnand %p1377_p5, %p197_p7  ;;  %s209_s7 = sshll.u32 %s2127_s6, 4  ;;  %s210_s7 = int_to_ptr.vmem [resolvable:$true] %s209_s7 }
  0x15   : > { %s2725_s29 = scalar_select %p2226_p6, 1, 0 }
  0x16   : > { %p1725_p9 = pneg %p2231_p8  ;;  %s1926_s8 = scalar_lea.vmem %s210_s7, 3072 }
  0x17   : > { %2726 = sst [smem:[#allocation17_spill]] %s2725_s29  ;;  %p1927_p12 = scmp.ne.s32.totalorder %s210_s7, %s1926_s8 }
  0x18   : > { %p1726_p10 = pnand %p1725_p9, %p61_p1  ;;  %p1934_p3 = scmp.lt.s32.totalorder %s210_s7, %s210_s7 }
  0x19   : > { %p1935_p2 = scmp.lt.s32.totalorder %s1926_s8, %s1926_s8 }
  0x1a   : > { %p1917_p11 = pneg %p1726_p10 }
  0x1b   : > { %p1936_p6 = por %p1935_p2, %p1934_p3 }
  0x1c   : > { %p1929_p13 = pnand %p1927_p12, %p1917_p11 }
  0x1e   : > { %p1930_p0 = pneg %p1929_p13 }
  0x20   : > { %p1937_p5 = pnand %p1936_p6, %p1930_p0 }
  0x22   : > { %1940 = shalt.err (!%p1937_p5)
}
  0x23   : > { %s2128_s9 = smov 192   ;;  %s2129_s10 = smov 12  }
  0x24   : > { %s2728_s1 = sld [smem:[#allocation19_spill]]  ;;  %s35_s13 = sadd.s32 1, %s2117_s23 }
  0x25   : > { %p36_p2 = scmp.ge.s32.totalorder %s35_s13, 2  ;;  %s38_s14 = sadd.s32 1, %s2121_s24 }
  0x26   : > { %s47_s15 = sadd.s32 1, %s2105_s20  ;;  %p54_p6 = scmp.ne.s32.totalorder %s2105_s20, %s2101_s19 }
  0x27   : > { %s2748_s13 = smov (%p36_p2, %s35_s13), 0  ;;  %s2750_s14 = smov (!%p36_p2, %s38_s14), %s2121_s24 }
  0x28   : > { %2729 = sst [smem:[#allocation18_spill]] %s2748_s13  ;;  %s43_s16 = ssub.s32 %s2117_s23, %s2748_s13 }
  0x29   : > { %p55_p7 = scmp.eq.s32.totalorder %s2125_s25, 0  ;;  %p40_p9 = scmp.ge.s32.totalorder %s2750_s14, 2 }
  0x2a   : > { %1728 = dma.hbm_to_vmem [thread:$0]  (!%p1726_p10), %s2728_s1, 3072, %s210_s7, [#allocation6], %s2128_s9, %s2128_s9, %s2129_s10  }
  0x2b   : > { %p2730_p11 = scmp.eq.s32.totalorder %s2210_s26, 3  ;;  %p2259_p10 = por %p55_p7, %p54_p6 }
  0x2c   : > { %p1744_p13 = scmp.lt.s32.totalorder %s2125_s25, 4  ;;  %s2752_s14 = smov (%p40_p9, %s2750_s14), 0 }
  0x2d   : > { %p2255_p12 = por %p2730_p11, %p54_p6  ;;  %s226_s7 = sand.u32 1, %s2105_s20  }
  0x2e   : > { %s1381_s8 = sshll.u32 %s2117_s23, 4  ;;  %s42_s9 = ssub.s32 %s2121_s24, %s2752_s14 }
  0x2f   : > { %s44_s10 = sor.u32 %s43_s16, %s42_s9  ;;  %s1380_s11 = sshll.u32 %s226_s7, 7 }
  0x30   : > { %p45_p0 = scmp.eq.s32.totalorder %s44_s10, 0  ;;  %s1382_s12 = sshll.u32 %s2121_s24, 5 }
  0x31   : > { %s230_s27 = scalar_lea.vmem [#allocation2], %s1380_s11  ;;  %s236_s29 = sadd.s32 %s1382_s12, %s1381_s8 }
  0x32   : > { %s239_s1 = sshll.u32 %s230_s27, 4  ;;  %s1383_s18 = sshll.u32 %s236_s29, 7  ;;  %s240_s1 = int_to_ptr.vmem [resolvable:$true] %s239_s1 }
  0x33   : > { %s2272_s13 = scalar_select %p45_p0, %s2105_s20, %s47_s15  }
  0x34   : > { %p2278_p3 = pnand %p1744_p13, %p2259_p10  ;;  %s238_s16 = scalar_lea.hbm %s2706_s0, %s1383_s18 }
  0x35   : > { %s227_s9 = scalar_lea.sflag [#allocation3], %s226_s7  ;;  %s1954_s27 = scalar_lea.vmem %s240_s1, 2048 }
  0x36   : > { %p1943_p5 = pneg %p2278_p3  ;;  %p1955_p2 = scmp.ne.s32.totalorder %s240_s1, %s1954_s27 }
  0x37   : > { %s2130_s15 = smov [#allocation2]  }
  0x38   : > { %p1957_p6 = pnand %p1955_p2, %p1943_p5  ;;  %s1959_s29 = sshll.u32 %s2130_s15, 4  ;;  %s1960_s29 = int_to_ptr.vmem [resolvable:$false] %s1959_s29 }
  0x39   : > { %s1961_s6 = scalar_lea.vmem %s1960_s29, 4096  ;;  %p1962_p9 = scmp.lt.s32.totalorder %s240_s1, %s1960_s29 }
  0x3a   : > { %p1958_p7 = pneg %p1957_p6  ;;  %p1963_p11 = scmp.lt.s32.totalorder %s1961_s6, %s1954_s27 }
  0x3c   : > { %p1964_p10 = por %p1963_p11, %p1962_p9 }
  0x3e   : > { %p1965_p13 = pnand %p1964_p10, %p1958_p7 }
  0x40   : > { %1968 = shalt.err (!%p1965_p13)
}
  0x41   : > { %s2131_s8 = smov 128   ;;  %s2132_s5 = smov 8  }
  0x42   : > { %1732 = dma.hbm_to_vmem [thread:$0]  (!%p2278_p3), %s238_s16, 2048, %s240_s1, %s227_s9, %s2131_s8, %s2131_s8, %s2132_s5  }
  0x43   : > { %251 = sbr.rel (%p2231_p8) target bundleno = 589 (0x24d), region = 32  ;;  %s2292_s18 = sand.u32 (!%p2231_p8), 1, %s2101_s19  }
  0x44   : > { %s1385_s23 = sshll.u32 (!%p2231_p8), %s2292_s18, 7  ;;  %s254_s7 = scalar_lea.sflag (!%p2231_p8), [#allocation3], %s2292_s18 }
  0x45   : > { %s2296_s10 = scalar_lea.vmem (!%p2231_p8), [#allocation2], %s1385_s23 }
  0x48   : > { %2080 = dma.done.wait (%p2221_p4), %s254_s7, 2048  }
  0x49   : > { %2082 = vsyncadd (%p2221_p4), %s254_s7, 4294965248 }
  0x4a   : > { %2084 = dma.done.wait (%p61_p1), [#allocation6], 3072  }
  0x4b   : > { %2086 = vsyncadd (%p61_p1), [#allocation6], 4294964224  ;;  %v2133_v0 = vmov 0   ;;  %v1819_v1 = vld [vmem:[#allocation5 + $0xac] ss:$12 sps:$4 sm:$0xff]   ;;  %v303_v8 = vld [vmem:[%s2296_s10] sm:$0xff]  ;;  %v361_v49 = vlaneseq }
  0x4c   : > { %536 = vmatprep.mubr.bf16.mxu0 %v2133_v0  ;;  %v1821_v2 = vld [vmem:[#allocation5 + $0xa8] ss:$12 sps:$4 sm:$0xff]   ;;  %504 = vmatprep.subr.bf16.mxu0 %v1819_v1  ;;  %v1824_v4 = vld [vmem:[#allocation5 + $0x90] ss:$12 sps:$4 sm:$0xff]   ;;  %v1827_v6 = vld [vmem:[#allocation5 + $0x78] ss:$12 sps:$4 sm:$0xff]  }
  0x4d   : > { %v1822_v3 = vld [vmem:[#allocation5 + $0x94] ss:$12 sps:$4 sm:$0xff]   ;;  %505 = vmatpush1.bf16.msra.mxu0 %v1821_v2  ;;  %v1825_v5 = vld [vmem:[#allocation5 + $0x7c] ss:$12 sps:$4 sm:$0xff]   ;;  %v1828_v7 = vld [vmem:[#allocation5 + $0x64] ss:$12 sps:$4 sm:$0xff]  }
  0x4e   : > { %506 = vmatprep.subr.bf16.mxu0 %v1822_v3  ;;  %v1830_v9 = vld [vmem:[#allocation5 + $0x60] ss:$12 sps:$4 sm:$0xff]   ;;  %v1833_v13 = vld [vmem:[#allocation5 + $0x48] ss:$12 sps:$4 sm:$0xff]   ;;  %v1843_v15 = vld [vmem:[#allocation5 + $0xb0] ss:$12 sps:$4 sm:$0xff]  }
  0x4f   : > { %v304_v10 = vld [vmem:[%s2296_s10 + $0x8] sm:$0xff]  ;;  %v1834_v14 = vld [vmem:[#allocation5 + $0x34] ss:$12 sps:$4 sm:$0xff]   ;;  %v1844_v16 = vld [vmem:[#allocation5 + $0x98] ss:$12 sps:$4 sm:$0xff]   ;;  %1681 = vmatprep.subr.bf16.mxu1 %v1843_v15  ;;  %v2330_v50 = vshrl.u32 %v361_v49, 7 }
  0x50   : > { %v1831_v11 = vld [vmem:[#allocation5 + $0x4c] ss:$12 sps:$4 sm:$0xff]   ;;  %v319_v12 = vpack.c.bf16 %v304_v10, %v303_v8  ;;  %v1836_v17 = vld [vmem:[#allocation5 + $0x30] ss:$12 sps:$4 sm:$0xff]   ;;  %1682 = vmatpush3.bf16.msra.mxu1 %v1843_v15  ;;  %v1846_v22 = vld [vmem:[#allocation5 + $0x68] ss:$12 sps:$4 sm:$0xff]  }
  0x51   : > { %507 = vmatpush1.bf16.msra.mxu0 %v1824_v4  ;;  %v1837_v18 = vld [vmem:[#allocation5 + $0x1c] ss:$12 sps:$4 sm:$0xff]   ;;  %1683 = vmatprep.subr.bf16.mxu1 %v1844_v16  ;;  %v1845_v19 = vld [vmem:[#allocation5 + $0x80] ss:$12 sps:$4 sm:$0xff]   ;;  %v1839_v20 = vld [vmem:[#allocation5 + $0x18] ss:$12 sps:$4 sm:$0xff]  }
  0x52   : > { %508 = vmatprep.subr.bf16.mxu0 %v1825_v5  ;;  %1697 = vmatprep.mubr.bf16.mxu1 %v319_v12  ;;  %v1840_v21 = vld [vmem:[#allocation5 + $0x4] ss:$12 sps:$4 sm:$0xff]   ;;  %v1842_v23 = vld [vmem:[#allocation5] ss:$12 sps:$4 sm:$0xff]   ;;  %v306_v27 = vld [vmem:[%s2296_s10 + $0x18] sm:$0xff]  ;;  %v363_v51 = vsub.s32 0, %v2330_v50 }
  0x53   : > { %v1847_v24 = vld [vmem:[#allocation5 + $0x50] ss:$12 sps:$4 sm:$0xff]   ;;  %v1848_v25 = vld [vmem:[#allocation5 + $0x38] ss:$12 sps:$4 sm:$0xff]   ;;  %v1849_v28 = vld [vmem:[#allocation5 + $0x20] ss:$12 sps:$4 sm:$0xff]  }
  0x54   : > { %1684 = vmatpush3.bf16.msra.mxu1 %v1844_v16  ;;  %v305_v26 = vld [vmem:[%s2296_s10 + $0x10] sm:$0xff]  ;;  %v307_v31 = vld [vmem:[%s2296_s10 + $0x20] sm:$0xff]  ;;  %v308_v32 = vld [vmem:[%s2296_s10 + $0x28] sm:$0xff]  ;;  %v367_v53 = vsub.s32 1, %v2330_v50  ;;  %s2508_s28 = sshll.u32 %s2292_s18, 6  ;;  %s1465_s16 = sshll.u32 %s2109_s21, 4 }
  0x55   : > { %509 = vmatpush1.bf16.msra.mxu0 %v1827_v6  ;;  %1685 = vmatprep.subr.bf16.mxu1 %v1845_v19  ;;  %v320_v29 = vpack.c.bf16 %v306_v27, %v305_v26  ;;  %v1850_v30 = vld [vmem:[#allocation5 + $0x8] ss:$12 sps:$4 sm:$0xff]   ;;  %v321_v33 = vpack.c.bf16 %v308_v32, %v307_v31  ;;  %v310_v35 = vld [vmem:[%s2296_s10 + $0x38] sm:$0xff]  ;;  %v311_v37 = vld [vmem:[%s2296_s10 + $0x40] sm:$0xff]  ;;  %s2511_s30 = scalar_lea.vmem [#allocation10], %s2508_s28  ;;  %s2524_s11 = scalar_lea.vmem [#allocation7], %s2508_s28 }
  0x56   : > { %510 = vmatprep.subr.bf16.mxu0 %v1828_v7  ;;  %v309_v34 = vld [vmem:[%s2296_s10 + $0x30] sm:$0xff]  ;;  %v312_v38 = vld [vmem:[%s2296_s10 + $0x48] sm:$0xff]  ;;  %v314_v41 = vld [vmem:[%s2296_s10 + $0x58] sm:$0xff]  ;;  %s2530_s12 = scalar_lea.vmem [#allocation8], %s2508_s28  ;;  %s1466_s9 = sshll.u32 %s2113_s22, 5 }
  0x57   : > { %v322_v36 = vpack.c.bf16 %v310_v35, %v309_v34  ;;  %v323_v39 = vpack.c.bf16 %v312_v38, %v311_v37  ;;  %v313_v40 = vld [vmem:[%s2296_s10 + $0x50] sm:$0xff]  ;;  %v315_v42 = vld [vmem:[%s2296_s10 + $0x60] sm:$0xff]  ;;  %v316_v43 = vld [vmem:[%s2296_s10 + $0x68] sm:$0xff]  ;;  %s1208_s27 = sshll.u32 %s2511_s30, 4  ;;  %s1169_s15 = sadd.s32 %s1466_s9, %s1465_s16  ;;  %s2572_s27 = int_to_ptr.vmem [resolvable:$true] %s1208_s27 }
  0x58   : > { %1686 = vmatpush3.bf16.msra.mxu1 %v1845_v19  ;;  %v324_v44 = vpack.c.bf16 %v314_v41, %v313_v40  ;;  %v325_v45 = vpack.c.bf16 %v316_v43, %v315_v42  ;;  %v317_v46 = vld [vmem:[%s2296_s10 + $0x70] sm:$0xff]  ;;  %v318_v47 = vld [vmem:[%s2296_s10 + $0x78] sm:$0xff]  ;;  %v2336_v52 = vld [vmem:[%s2708_s2] sm:$0x7]  ;;  %s1151_s29 = sand.u32 1, %s2210_s26   ;;  %s1467_s21 = sshll.u32 %s1169_s15, 6 }
  0x59   : > { %511 = vmatpush1.bf16.msra.mxu0 %v1830_v9  ;;  %1687 = vmatprep.subr.bf16.mxu1 %v1846_v22  ;;  %v326_v48 = vpack.c.bf16 %v318_v47, %v317_v46  ;;  %v2340_v54 = vrot.slane %v2336_v52, %v363_v51  ;;  %v2343_v55 = vrot.slane %v2336_v52, %v367_v53  ;;  %s1190_s6 = sshll.u32 %s2530_s12, 4  ;;  %s1172_s22 = sshll.u32 %s2524_s11, 4  ;;  %s2584_s6 = int_to_ptr.vmem [resolvable:$true] %s1190_s6  ;;  %s2599_s22 = int_to_ptr.vmem [resolvable:$true] %s1172_s22 }
  0x5a   : > { %512 = vmatprep.subr.bf16.mxu0 %v1831_v11  ;;  %s2582_s26 = scalar_lea.hbm %s2710_s4, %s1467_s21  ;;  %s2734_s10 = sld [smem:[#allocation21_spill]] }
  0x5b   : > { %s2601_s9 = scalar_lea.sflag [#allocation9], %s1151_s29  ;;  %s1969_s15 = scalar_lea.vmem %s2584_s6, 1024 }
  0x5c   : > { %1688 = vmatpush3.bf16.msra.mxu1 %v1846_v22  ;;  %p1970_p1 = scmp.ne.s32.totalorder %s2584_s6, %s1969_s15  ;;  %s2134_s8 = smov [#allocation8]  }
  0x5d   : > { %513 = vmatpush1.bf16.msra.mxu0 %v1833_v13  ;;  %1689 = vmatprep.subr.bf16.mxu1 %v1847_v24 }
  0x5e   : > { %514 = vmatprep.subr.bf16.mxu0 %v1834_v14  ;;  %p1971_p4 = pnand %p1970_p1, %p2255_p12 }
  0x60   : > { %1690 = vmatpush3.bf16.msra.mxu1 %v1847_v24  ;;  %s2589_s1 = scalar_lea.hbm %s2734_s10, %s1467_s21  ;;  %p1972_p8 = pneg %p1971_p4 }
  0x61   : > { %515 = vmatpush1.bf16.msra.mxu0 %v1836_v17  ;;  %1691 = vmatprep.subr.bf16.mxu1 %v1848_v25 }
  0x62   : > { %516 = vmatprep.subr.bf16.mxu0 %v1837_v18 }
  0x64   : > { %1692 = vmatpush3.bf16.msra.mxu1 %v1848_v25 }
  0x65   : > { %517 = vmatpush1.bf16.msra.mxu0 %v1839_v20  ;;  %1693 = vmatprep.subr.bf16.mxu1 %v1849_v28 }
  0x66   : > { %518 = vmatprep.subr.bf16.mxu0 %v1840_v21 }
  0x68   : > { %1694 = vmatpush3.bf16.msra.mxu1 %v1849_v28 }
  0x69   : > { %519 = vmatpush1.bf16.msra.mxu0 %v1842_v23  ;;  %1695 = vmatprep.subr.bf16.mxu1 %v1850_v30 }
  0x6c   : > { %537 = vmatmul.mubr.bf16.vlgmr.msra.gmra.mxu0 %v319_v12  ;;  %1696 = vmatpush3.bf16.msra.mxu1 %v1850_v30 }
  0x6d   : > { %546 = vmatprep.mubr.bf16.mxu0 %v2133_v0 }
  0x6f   : > { %1698 = vmatmul.mubr.bf16.vlgmr.msra.gmra.mxu1 %v320_v29 }
  0x70   : > { %1701 = vmatprep.mubr.bf16.mxu1 %v321_v33 }
  0x74   : > { %547 = vmatmul.mubr.bf16.gmra.mxu0 %v320_v29 }
  0x75   : > { %556 = vmatprep.mubr.bf16.mxu0 %v2133_v0 }
  0x77   : > { %1702 = vmatmul.mubr.bf16.gmra.mxu1 %v322_v36 }
  0x78   : > { %1705 = vmatprep.mubr.bf16.mxu1 %v323_v39 }
  0x7c   : > { %557 = vmatmul.mubr.bf16.gmra.mxu0 %v321_v33 }
  0x7d   : > { %566 = vmatprep.mubr.bf16.mxu0 %v2133_v0 }
  0x7f   : > { %1706 = vmatmul.mubr.bf16.gmra.mxu1 %v324_v44 }
  0x80   : > { %1709 = vmatprep.mubr.bf16.mxu1 %v325_v45 }
  0x84   : > { %567 = vmatmul.mubr.bf16.gmra.mxu0 %v322_v36 }
  0x85   : > { %576 = vmatprep.mubr.bf16.mxu0 %v2133_v0 }
  0x87   : > { %1710 = vmatmul.mubr.bf16.gmra.mxu1 %v326_v48 }
  0x8c   : > { %577 = vmatmul.mubr.bf16.gmra.mxu0 %v323_v39 }
  0x8d   : > { %586 = vmatprep.mubr.bf16.mxu0 %v2133_v0 }
  0x94   : > { %587 = vmatmul.mubr.bf16.gmra.mxu0 %v324_v44 }
  0x95   : > { %596 = vmatprep.mubr.bf16.mxu0 %v2133_v0 }
  0x9c   : > { %597 = vmatmul.mubr.bf16.gmra.mxu0 %v325_v45 }
  0x9d   : > { %606 = vmatprep.mubr.bf16.mxu0 %v2133_v0 }
  0xa4   : > { %607 = vmatmul.mubr.bf16.gmra.mxu0 %v326_v48 }
 0x12c   : > { %v538_v56 = vpop.f32.mrf.mxu0 }
 0x12d   : > { %v2346_v57 = vadd.f32 %v538_v56, %v2340_v54 }
 0x12e   : > { %v540_v58 = vpop.f32.mrf.mxu0 }
 0x12f   : > { %v2349_v59 = vadd.f32 %v540_v58, %v2343_v55  ;;  %v714_v60 = vmul.f32 %v2346_v57, %v2346_v57 }
 0x130   : > { %v542_v61 = vpop.f32.mrf.mxu0 }
 0x131   : > { %v2354_v62 = vadd.f32 %v542_v61, %v2340_v54  ;;  %730 = vadd.xlane.f32.xlu0 %v714_v60  ;;  %v794_v2 = vmul.f32 %v2349_v59, %v2349_v59 }
 0x132   : > { %v544_v63 = vpop.f32.mrf.mxu0 }
 0x133   : > { %v2357_v0 = vadd.f32 %v544_v63, %v2343_v55  ;;  %v715_v1 = vmul.f32 %v2354_v62, %v2354_v62 }
 0x134   : > { %v548_v3 = vpop.f32.mrf.mxu0 }
 0x135   : > { %732 = vadd.xlane.f32.xlu1 %v715_v1  ;;  %810 = vadd.xlane.f32.xlu0 %v794_v2  ;;  %v2364_v5 = vadd.f32 %v548_v3, %v2340_v54  ;;  %v795_v7 = vmul.f32 %v2357_v0, %v2357_v0 }
 0x136   : > { %v550_v4 = vpop.f32.mrf.mxu0 }
 0x137   : > { %v2367_v6 = vadd.f32 %v550_v4, %v2343_v55  ;;  %v716_v12 = vmul.f32 %v2364_v5, %v2364_v5 }
 0x138   : > { %v552_v8 = vpop.f32.mrf.mxu0 }
 0x139   : > { %v2372_v9 = vadd.f32 %v552_v8, %v2340_v54  ;;  %812 = vadd.xlane.f32.xlu0 %v795_v7  ;;  %v796_v10 = vmul.f32 %v2367_v6, %v2367_v6 }
 0x13a   : > { %v554_v11 = vpop.f32.mrf.mxu0 }
 0x13b   : > { %814 = vadd.xlane.f32.xlu1 %v796_v10  ;;  %v2379_v14 = vadd.f32 %v554_v11, %v2343_v55  ;;  %v717_v16 = vmul.f32 %v2372_v9, %v2372_v9 }
 0x13c   : > { %v558_v13 = vpop.f32.mrf.mxu0 }
 0x13d   : > { %v2382_v15 = vadd.f32 %v558_v13, %v2340_v54  ;;  %734 = vadd.xlane.f32.xlu0 %v716_v12  ;;  %v797_v22 = vmul.f32 %v2379_v14, %v2379_v14 }
 0x13e   : > { %v560_v17 = vpop.f32.mrf.mxu0 }
 0x13f   : > { %v2387_v18 = vadd.f32 %v560_v17, %v2343_v55  ;;  %736 = vadd.xlane.f32.xlu1 %v717_v16  ;;  %v718_v19 = vmul.f32 %v2382_v15, %v2382_v15 }
 0x140   : > { %v562_v20 = vpop.f32.mrf.mxu0 }
 0x141   : > { %v2392_v21 = vadd.f32 %v562_v20, %v2340_v54  ;;  %738 = vadd.xlane.f32.xlu0 %v718_v19  ;;  %v798_v24 = vmul.f32 %v2387_v18, %v2387_v18 }
 0x142   : > { %v564_v23 = vpop.f32.mrf.mxu0 }
 0x143   : > { %816 = vadd.xlane.f32.xlu1 %v797_v22  ;;  %v2399_v26 = vadd.f32 %v564_v23, %v2343_v55  ;;  %v719_v28 = vmul.f32 %v2392_v21, %v2392_v21 }
 0x144   : > { %v568_v25 = vpop.f32.mrf.mxu0 }
 0x145   : > { %v2402_v27 = vadd.f32 %v568_v25, %v2340_v54  ;;  %818 = vadd.xlane.f32.xlu0 %v798_v24  ;;  %v799_v34 = vmul.f32 %v2399_v26, %v2399_v26 }
 0x146   : > { %v570_v29 = vpop.f32.mrf.mxu0 }
 0x147   : > { %v2407_v30 = vadd.f32 %v570_v29, %v2343_v55  ;;  %740 = vadd.xlane.f32.xlu1 %v719_v28  ;;  %v720_v31 = vmul.f32 %v2402_v27, %v2402_v27 }
 0x148   : > { %v572_v32 = vpop.f32.mrf.mxu0 }
 0x149   : > { %v2412_v33 = vadd.f32 %v572_v32, %v2340_v54  ;;  %742 = vadd.xlane.f32.xlu0 %v720_v31  ;;  %v800_v36 = vmul.f32 %v2407_v30, %v2407_v30 }
 0x14a   : > { %v574_v35 = vpop.f32.mrf.mxu0 }
 0x14b   : > { %820 = vadd.xlane.f32.xlu1 %v799_v34  ;;  %v2419_v38 = vadd.f32 %v574_v35, %v2343_v55  ;;  %v721_v40 = vmul.f32 %v2412_v33, %v2412_v33 }
 0x14c   : > { %v578_v37 = vpop.f32.mrf.mxu0 }
 0x14d   : > { %v2422_v39 = vadd.f32 %v578_v37, %v2340_v54  ;;  %822 = vadd.xlane.f32.xlu0 %v800_v36  ;;  %v801_v46 = vmul.f32 %v2419_v38, %v2419_v38  ;;  %v1699_v37 = vpop.f32.mrf.mxu1 }
 0x14e   : > { %v580_v41 = vpop.f32.mrf.mxu0 }
 0x14f   : > { %v2427_v42 = vadd.f32 %v580_v41, %v2343_v55  ;;  %744 = vadd.xlane.f32.xlu1 %v721_v40  ;;  %v722_v43 = vmul.f32 %v2422_v39, %v2422_v39 }
 0x150   : > { %v582_v44 = vpop.f32.mrf.mxu0 }
 0x151   : > { %v2432_v45 = vadd.f32 %v582_v44, %v2340_v54  ;;  %746 = vadd.xlane.f32.xlu0 %v722_v43  ;;  %v802_v48 = vmul.f32 %v2427_v42, %v2427_v42  ;;  %v651_v43 = vpop.f32.mrf.mxu1  ;;  %v371_v44 = vsub.s32 2, %v2330_v50 }
 0x152   : > { %v584_v47 = vpop.f32.mrf.mxu0 }
 0x153   : > { %824 = vadd.xlane.f32.xlu1 %v801_v46  ;;  %v2439_v51 = vadd.f32 %v584_v47, %v2343_v55  ;;  %v723_v56 = vmul.f32 %v2432_v45, %v2432_v45 }
 0x154   : > { %v588_v49 = vpop.f32.mrf.mxu0 }
 0x155   : > { %v2442_v53 = vadd.f32 %v588_v49, %v2340_v54  ;;  %826 = vadd.xlane.f32.xlu0 %v802_v48  ;;  %v803_v2 = vmul.f32 %v2439_v51, %v2439_v51  ;;  %v1700_v49 = vpop.f32.mrf.mxu1 }
 0x156   : > { %v590_v58 = vpop.f32.mrf.mxu0 }
 0x157   : > { %v2447_v60 = vadd.f32 %v590_v58, %v2343_v55  ;;  %748 = vadd.xlane.f32.xlu1 %v723_v56  ;;  %v724_v61 = vmul.f32 %v2442_v53, %v2442_v53  ;;  %v372_v56 = vrot.slane %v2336_v52, %v371_v44 }
 0x158   : > { %v592_v63 = vpop.f32.mrf.mxu0 }
 0x159   : > { %v2452_v1 = vadd.f32 %v592_v63, %v2340_v54  ;;  %750 = vadd.xlane.f32.xlu0 %v724_v61  ;;  %v804_v4 = vmul.f32 %v2447_v60, %v2447_v60  ;;  %v660_v58 = vadd.f32 %v1699_v37, %v372_v56  ;;  %v652_v61 = vadd.f32 %v651_v43, %v372_v56 }
 0x15a   : > { %v594_v3 = vpop.f32.mrf.mxu0  ;;  %v663_v63 = vadd.f32 %v1700_v49, %v372_v56 }
 0x15b   : > { %828 = vadd.xlane.f32.xlu1 %v803_v2  ;;  %v2459_v8 = vadd.f32 %v594_v3, %v2343_v55  ;;  %v725_v11 = vmul.f32 %v2452_v1, %v2452_v1 }
 0x15c   : > { %v598_v7 = vpop.f32.mrf.mxu0  ;;  %v1612_v3 = vpack.c.bf16 %v663_v63, %v660_v58 }
 0x15d   : > { %v2462_v10 = vadd.f32 %v598_v7, %v2340_v54  ;;  %830 = vadd.xlane.f32.xlu0 %v804_v4  ;;  %v805_v20 = vmul.f32 %v2459_v8, %v2459_v8 }
 0x15e   : > { %v600_v12 = vpop.f32.mrf.mxu0  ;;  %1658 = vst [vmem:[%s2511_s30 + $0x8] sm:$0xff] %v1612_v3  }
 0x15f   : > { %v2467_v13 = vadd.f32 %v600_v12, %v2343_v55  ;;  %752 = vadd.xlane.f32.xlu1 %v725_v11  ;;  %v726_v16 = vmul.f32 %v2462_v10, %v2462_v10 }
 0x160   : > { %v602_v17 = vpop.f32.mrf.mxu0 }
 0x161   : > { %v2472_v19 = vadd.f32 %v602_v17, %v2340_v54  ;;  %754 = vadd.xlane.f32.xlu0 %v726_v16  ;;  %v806_v23 = vmul.f32 %v2467_v13, %v2467_v13 }
 0x162   : > { %v604_v22 = vpop.f32.mrf.mxu0 }
 0x163   : > { %832 = vadd.xlane.f32.xlu1 %v805_v20  ;;  %v2479_v25 = vadd.f32 %v604_v22, %v2343_v55  ;;  %v727_v28 = vmul.f32 %v2472_v19, %v2472_v19 }
 0x164   : > { %v608_v24 = vpop.f32.mrf.mxu0 }
 0x165   : > { %834 = vadd.xlane.f32.xlu0 %v806_v23  ;;  %v2487_v34 = vadd.f32 %v608_v24, %v2340_v54  ;;  %v807_v35 = vmul.f32 %v2479_v25, %v2479_v25 }
 0x166   : > { %v610_v29 = vpop.f32.mrf.mxu0 }
 0x167   : > { %v2484_v31 = vadd.f32 %v610_v29, %v2343_v55  ;;  %756 = vadd.xlane.f32.xlu1 %v727_v28  ;;  %v728_v48 = vmul.f32 %v2487_v34, %v2487_v34 }
 0x168   : > { %v612_v32 = vpop.f32.mrf.mxu0 }
 0x169   : > { %v808_v36 = vmul.f32 %v2484_v31, %v2484_v31  ;;  %v2498_v46 = vadd.f32 %v612_v32, %v2340_v54 }
 0x16a   : > { %v614_v40 = vpop.f32.mrf.mxu0 }
 0x16b   : > { %v2494_v41 = vadd.f32 %v614_v40, %v2343_v55  ;;  %836 = vadd.xlane.f32.xlu1 %v807_v35  ;;  %838 = vadd.xlane.f32.xlu0 %v808_v36  ;;  %v654_v55 = vpop.f32.mrf.mxu1  ;;  %v729_v50 = vmul.f32 %v2498_v46, %v2498_v46 }
 0x16c   : > { %v655_v2 = vadd.f32 %v654_v55, %v372_v56 }
 0x16d   : > { %v809_v47 = vmul.f32 %v2494_v41, %v2494_v41  ;;  %v1703_v54 = vpop.f32.mrf.mxu1 }
 0x16e   : > { %v1607_v4 = vpack.c.bf16 %v655_v2, %v652_v61  ;;  %v676_v12 = vadd.f32 %v1703_v54, %v372_v56 }
 0x16f   : > { %840 = vadd.xlane.f32.xlu1 %v809_v47  ;;  %758 = vadd.xlane.f32.xlu0 %v728_v48  ;;  %v667_v7 = vpop.f32.mrf.mxu1 }
 0x170   : > { %1608 = vst [vmem:[%s2511_s30] sm:$0xff] %v1607_v4   ;;  %v668_v16 = vadd.f32 %v667_v7, %v372_v56 }
 0x171   : > { %v1704_v52 = vpop.f32.mrf.mxu1 }
 0x172   : > { %v679_v17 = vadd.f32 %v1704_v52, %v372_v56 }
 0x173   : > { %760 = vadd.xlane.f32.xlu1 %v729_v50  ;;  %v670_v11 = vpop.f32.mrf.mxu1 }
 0x174   : > { %v671_v20 = vadd.f32 %v670_v11, %v372_v56  ;;  %v1622_v23 = vpack.c.bf16 %v679_v17, %v676_v12 }
 0x175   : > { %v1707_v22 = vpop.f32.mrf.mxu1 }
 0x176   : > { %v1617_v24 = vpack.c.bf16 %v671_v20, %v668_v16  ;;  %1660 = vst [vmem:[%s2511_s30 + $0x18] sm:$0xff] %v1622_v23   ;;  %v692_v35 = vadd.f32 %v1707_v22, %v372_v56 }
 0x177   : > { %v683_v28 = vpop.f32.mrf.mxu1 }
 0x178   : > { %1659 = vst [vmem:[%s2511_s30 + $0x10] sm:$0xff] %v1617_v24   ;;  %v684_v36 = vadd.f32 %v683_v28, %v372_v56 }
 0x179   : > { %v1708_v29 = vpop.f32.mrf.mxu1 }
 0x17a   : > { %v695_v37 = vadd.f32 %v1708_v29, %v372_v56 }
 0x17b   : > { %v686_v32 = vpop.f32.mrf.mxu1 }
 0x17c   : > { %v687_v40 = vadd.f32 %v686_v32, %v372_v56  ;;  %v1632_v44 = vpack.c.bf16 %v695_v37, %v692_v35 }
 0x17d   : > { %v1711_v43 = vpop.f32.mrf.mxu1 }
 0x17e   : > { %v1627_v47 = vpack.c.bf16 %v687_v40, %v684_v36  ;;  %1662 = vst [vmem:[%s2511_s30 + $0x28] sm:$0xff] %v1632_v44   ;;  %v708_v58 = vadd.f32 %v1711_v43, %v372_v56 }
 0x17f   : > { %v699_v48 = vpop.f32.mrf.mxu1 }
 0x180   : > { %1661 = vst [vmem:[%s2511_s30 + $0x20] sm:$0xff] %v1627_v47   ;;  %v700_v61 = vadd.f32 %v699_v48, %v372_v56 }
 0x181   : > { %v1712_v49 = vpop.f32.mrf.mxu1 }
 0x182   : > { %v711_v63 = vadd.f32 %v1712_v49, %v372_v56 }
 0x183   : > { %v702_v55 = vpop.f32.mrf.mxu1 }
 0x184   : > { %v703_v2 = vadd.f32 %v702_v55, %v372_v56  ;;  %v1642_v50 = vpack.c.bf16 %v711_v63, %v708_v58 }
 0x186   : > { %v1637_v54 = vpack.c.bf16 %v703_v2, %v700_v61  ;;  %1664 = vst [vmem:[%s2511_s30 + $0x38] sm:$0xff] %v1642_v50  }
 0x188   : > { %1663 = vst [vmem:[%s2511_s30 + $0x30] sm:$0xff] %v1637_v54   ;;  %s2735_s30 = sld [smem:[#allocation20_spill]] }
 0x18e   : > { %s2597_s16 = scalar_lea.hbm %s2735_s30, %s1467_s21 }
 0x1ba   : > { %v731_v3 = vpop.xlane.xlu0 %730 }
 0x1bb   : > { %v762_v4 = vmax.f32 %v731_v3, 1e-12 }
 0x1bd   : > { %1851 = vrsqrt.f32 %v762_v4 }
 0x1be   : > { %v733_v7 = vpop.xlane.xlu1 %732  ;;  %v811_v52 = vpop.xlane.xlu0 %810 }
 0x1bf   : > { %v763_v11 = vmax.f32 %v733_v7, 1e-12  ;;  %v842_v12 = vmax.f32 %v811_v52, 1e-12 }
 0x1c1   : > { %1853 = vrsqrt.f32 %v763_v11 }
 0x1c2   : > { %v813_v16 = vpop.xlane.xlu0 %812  ;;  %1855 = vrsqrt.f32 %v842_v12 }
 0x1c3   : > { %v843_v17 = vmax.f32 %v813_v16, 1e-12 }
 0x1c4   : > { %v815_v20 = vpop.xlane.xlu1 %814 }
 0x1c5   : > { %1857 = vrsqrt.f32 %v843_v17  ;;  %v844_v24 = vmax.f32 %v815_v20, 1e-12 }
 0x1c6   : > { %v735_v22 = vpop.xlane.xlu0 %734 }
 0x1c7   : > { %v764_v23 = vmax.f32 %v735_v22, 1e-12 }
 0x1c8   : > { %v737_v56 = vpop.xlane.xlu1 %736 }
 0x1c9   : > { %1859 = vrsqrt.f32 %v764_v23  ;;  %v765_v28 = vmax.f32 %v737_v56, 1e-12 }
 0x1ca   : > { %v739_v29 = vpop.xlane.xlu0 %738  ;;  %v1852_v32 = vpop.eup %1851 }
 0x1cb   : > { %1861 = vrsqrt.f32 %v765_v28  ;;  %v766_v36 = vmax.f32 %v739_v29, 1e-12  ;;  %v874_v44 = vmul.f32 %v1852_v32, %v2346_v57 }
 0x1cc   : > { %v817_v35 = vpop.xlane.xlu1 %816  ;;  %1863 = vrsqrt.f32 %v844_v24 }
 0x1cd   : > { %v845_v37 = vmax.f32 %v817_v35, 1e-12 }
 0x1ce   : > { %v1854_v40 = vpop.eup %1853  ;;  %v819_v43 = vpop.xlane.xlu0 %818 }
 0x1cf   : > { %v875_v47 = vmul.f32 %v1854_v40, %v2354_v62  ;;  %1865 = vrsqrt.f32 %v845_v37  ;;  %v1856_v48 = vpop.eup %1855  ;;  %v846_v58 = vmax.f32 %v819_v43, 1e-12 }
 0x1d0   : > { %v741_v49 = vpop.xlane.xlu1 %740  ;;  %1867 = vrsqrt.f32 %v766_v36  ;;  %v970_v50 = vmul.f32 %v1856_v48, %v2349_v59 }
 0x1d1   : > { %v1527_v55 = vpack.c.bf16 %v875_v47, %v874_v44  ;;  %v767_v61 = vmax.f32 %v741_v49, 1e-12 }
 0x1d2   : > { %v1858_v63 = vpop.eup %1857  ;;  %v743_v2 = vpop.xlane.xlu0 %742 }
 0x1d3   : > { %1528 = vst [vmem:[%s2524_s11] sm:$0xff] %v1527_v55   ;;  %v971_v57 = vmul.f32 %v1858_v63, %v2357_v0  ;;  %1869 = vrsqrt.f32 %v767_v61  ;;  %v768_v3 = vmax.f32 %v743_v2, 1e-12 }
 0x1d4   : > { %v821_v62 = vpop.xlane.xlu1 %820  ;;  %1871 = vrsqrt.f32 %v846_v58 }
 0x1d5   : > { %v1567_v54 = vpack.c.bf16 %v971_v57, %v970_v50  ;;  %v847_v4 = vmax.f32 %v821_v62, 1e-12 }
 0x1d6   : > { %v1860_v7 = vpop.eup %1859  ;;  %v823_v52 = vpop.xlane.xlu0 %822 }
 0x1d7   : > { %1568 = vst [vmem:[%s2530_s12] sm:$0xff] %v1567_v54   ;;  %1873 = vrsqrt.f32 %v847_v4  ;;  %v848_v12 = vmax.f32 %v823_v52, 1e-12  ;;  %v876_v59 = vmul.f32 %v1860_v7, %v2364_v5 }
 0x1d8   : > { %v1862_v11 = vpop.eup %1861  ;;  %v745_v16 = vpop.xlane.xlu1 %744  ;;  %1875 = vrsqrt.f32 %v768_v3 }
 0x1d9   : > { %v877_v0 = vmul.f32 %v1862_v11, %v2372_v9  ;;  %v769_v17 = vmax.f32 %v745_v16, 1e-12  ;;  %v1864_v20 = vpop.eup %1863 }
 0x1da   : > { %v747_v22 = vpop.xlane.xlu0 %746  ;;  %v972_v29 = vmul.f32 %v1864_v20, %v2367_v6 }
 0x1db   : > { %v1532_v23 = vpack.c.bf16 %v877_v0, %v876_v59  ;;  %1877 = vrsqrt.f32 %v769_v17  ;;  %v770_v24 = vmax.f32 %v747_v22, 1e-12 }
 0x1dc   : > { %v1866_v56 = vpop.eup %1865  ;;  %1879 = vrsqrt.f32 %v848_v12  ;;  %v825_v28 = vpop.xlane.xlu1 %824 }
 0x1dd   : > { %1644 = vst [vmem:[%s2524_s11 + $0x8] sm:$0xff] %v1532_v23   ;;  %v973_v32 = vmul.f32 %v1866_v56, %v2379_v14  ;;  %v849_v35 = vmax.f32 %v825_v28, 1e-12  ;;  %v1868_v5 = vpop.eup %1867 }
 0x1de   : > { %v827_v36 = vpop.xlane.xlu0 %826  ;;  %v878_v44 = vmul.f32 %v1868_v5, %v2382_v15 }
 0x1df   : > { %v1572_v9 = vpack.c.bf16 %v973_v32, %v972_v29  ;;  %1881 = vrsqrt.f32 %v849_v35  ;;  %v850_v40 = vmax.f32 %v827_v36, 1e-12 }
 0x1e0   : > { %v1870_v37 = vpop.eup %1869  ;;  %1883 = vrsqrt.f32 %v770_v24  ;;  %v749_v43 = vpop.xlane.xlu1 %748 }
 0x1e1   : > { %1651 = vst [vmem:[%s2530_s12 + $0x8] sm:$0xff] %v1572_v9   ;;  %v879_v47 = vmul.f32 %v1870_v37, %v2392_v21  ;;  %v771_v48 = vmax.f32 %v749_v43, 1e-12  ;;  %v1872_v6 = vpop.eup %1871 }
 0x1e2   : > { %v751_v49 = vpop.xlane.xlu0 %750  ;;  %v974_v63 = vmul.f32 %v1872_v6, %v2387_v18 }
 0x1e3   : > { %v1537_v55 = vpack.c.bf16 %v879_v47, %v878_v44  ;;  %1885 = vrsqrt.f32 %v771_v48  ;;  %v772_v58 = vmax.f32 %v751_v49, 1e-12 }
 0x1e4   : > { %v1874_v14 = vpop.eup %1873  ;;  %1887 = vrsqrt.f32 %v850_v40  ;;  %v829_v61 = vpop.xlane.xlu1 %828 }
 0x1e5   : > { %1645 = vst [vmem:[%s2524_s11 + $0x10] sm:$0xff] %v1537_v55   ;;  %v975_v2 = vmul.f32 %v1874_v14, %v2399_v26  ;;  %v851_v50 = vmax.f32 %v829_v61, 1e-12  ;;  %v1876_v15 = vpop.eup %1875 }
 0x1e6   : > { %v831_v57 = vpop.xlane.xlu0 %830  ;;  %v880_v4 = vmul.f32 %v1876_v15, %v2402_v27 }
 0x1e7   : > { %v1577_v62 = vpack.c.bf16 %v975_v2, %v974_v63  ;;  %1889 = vrsqrt.f32 %v851_v50  ;;  %v852_v52 = vmax.f32 %v831_v57, 1e-12 }
 0x1e8   : > { %v1878_v21 = vpop.eup %1877  ;;  %1891 = vrsqrt.f32 %v772_v58  ;;  %v753_v54 = vpop.xlane.xlu1 %752 }
 0x1e9   : > { %v1880_v3 = vpop.eup %1879  ;;  %1652 = vst [vmem:[%s2530_s12 + $0x10] sm:$0xff] %v1577_v62   ;;  %v881_v7 = vmul.f32 %v1878_v21, %v2412_v33  ;;  %v773_v18 = vmax.f32 %v753_v54, 1e-12 }
 0x1ea   : > { %v755_v11 = vpop.xlane.xlu0 %754  ;;  %v976_v16 = vmul.f32 %v1880_v3, %v2407_v30 }
 0x1eb   : > { %v1542_v12 = vpack.c.bf16 %v881_v7, %v880_v4  ;;  %1893 = vrsqrt.f32 %v773_v18  ;;  %v774_v20 = vmax.f32 %v755_v11, 1e-12 }
 0x1ec   : > { %v1882_v26 = vpop.eup %1881  ;;  %v833_v59 = vpop.xlane.xlu1 %832  ;;  %1895 = vrsqrt.f32 %v852_v52 }
 0x1ed   : > { %v1884_v0 = vpop.eup %1883  ;;  %1646 = vst [vmem:[%s2524_s11 + $0x18] sm:$0xff] %v1542_v12   ;;  %v977_v17 = vmul.f32 %v1882_v26, %v2419_v38  ;;  %v853_v27 = vmax.f32 %v833_v59, 1e-12 }
 0x1ee   : > { %v835_v22 = vpop.xlane.xlu0 %834  ;;  %v882_v56 = vmul.f32 %v1884_v0, %v2422_v39 }
 0x1ef   : > { %v1582_v23 = vpack.c.bf16 %v977_v17, %v976_v16  ;;  %1897 = vrsqrt.f32 %v853_v27  ;;  %v854_v29 = vmax.f32 %v835_v22, 1e-12 }
 0x1f0   : > { %v1886_v33 = vpop.eup %1885  ;;  %v757_v24 = vpop.xlane.xlu1 %756  ;;  %1899 = vrsqrt.f32 %v774_v20 }
 0x1f1   : > { %v1888_v28 = vpop.eup %1887  ;;  %1653 = vst [vmem:[%s2530_s12 + $0x18] sm:$0xff] %v1582_v23   ;;  %v883_v30 = vmul.f32 %v1886_v33, %v2432_v45  ;;  %v775_v32 = vmax.f32 %v757_v24, 1e-12 }
 0x1f2   : > { %v978_v5 = vmul.f32 %v1888_v28, %v2427_v42 }
 0x1f3   : > { %v1547_v35 = vpack.c.bf16 %v883_v30, %v882_v56  ;;  %1901 = vrsqrt.f32 %v775_v32 }
 0x1f4   : > { %v1890_v38 = vpop.eup %1889  ;;  %v837_v36 = vpop.xlane.xlu1 %836  ;;  %1903 = vrsqrt.f32 %v854_v29 }
 0x1f5   : > { %v839_v9 = vpop.xlane.xlu0 %838  ;;  %v1892_v37 = vpop.eup %1891  ;;  %1647 = vst [vmem:[%s2524_s11 + $0x20] sm:$0xff] %v1547_v35   ;;  %v979_v39 = vmul.f32 %v1890_v38, %v2439_v51  ;;  %v855_v40 = vmax.f32 %v837_v36, 1e-12 }
 0x1f6   : > { %v856_v43 = vmax.f32 %v839_v9, 1e-12  ;;  %v884_v47 = vmul.f32 %v1892_v37, %v2442_v53 }
 0x1f7   : > { %v1587_v44 = vpack.c.bf16 %v979_v39, %v978_v5  ;;  %1905 = vrsqrt.f32 %v855_v40 }
 0x1f8   : > { %v1894_v45 = vpop.eup %1893  ;;  %v841_v48 = vpop.xlane.xlu1 %840  ;;  %1907 = vrsqrt.f32 %v856_v43 }
 0x1f9   : > { %v759_v6 = vpop.xlane.xlu0 %758  ;;  %1654 = vst [vmem:[%s2530_s12 + $0x20] sm:$0xff] %v1587_v44   ;;  %v885_v42 = vmul.f32 %v1894_v45, %v2452_v1  ;;  %v857_v49 = vmax.f32 %v841_v48, 1e-12  ;;  %v1896_v14 = vpop.eup %1895 }
 0x1fa   : > { %v776_v55 = vmax.f32 %v759_v6, 1e-12  ;;  %v980_v63 = vmul.f32 %v1896_v14, %v2447_v60 }
 0x1fb   : > { %v1552_v51 = vpack.c.bf16 %v885_v42, %v884_v47  ;;  %1909 = vrsqrt.f32 %v857_v49 }
 0x1fc   : > { %v1898_v58 = vpop.eup %1897  ;;  %v761_v61 = vpop.xlane.xlu1 %760  ;;  %1911 = vrsqrt.f32 %v776_v55 }
 0x1fd   : > { %1648 = vst [vmem:[%s2524_s11 + $0x28] sm:$0xff] %v1552_v51   ;;  %v981_v53 = vmul.f32 %v1898_v58, %v2459_v8  ;;  %v777_v1 = vmax.f32 %v761_v61, 1e-12  ;;  %v1900_v2 = vpop.eup %1899 }
 0x1fe   : > { %v886_v57 = vmul.f32 %v1900_v2, %v2462_v10 }
 0x1ff   : > { %v1592_v50 = vpack.c.bf16 %v981_v53, %v980_v63  ;;  %1913 = vrsqrt.f32 %v777_v1 }
 0x200   : > { %v1902_v15 = vpop.eup %1901 }
 0x201   : > { %1655 = vst [vmem:[%s2530_s12 + $0x28] sm:$0xff] %v1592_v50   ;;  %v887_v62 = vmul.f32 %v1902_v15, %v2472_v19  ;;  %v1904_v21 = vpop.eup %1903 }
 0x202   : > { %v982_v54 = vmul.f32 %v1904_v21, %v2467_v13 }
 0x203   : > { %v1557_v60 = vpack.c.bf16 %v887_v62, %v886_v57 }
 0x204   : > { %v1906_v8 = vpop.eup %1905 }
 0x205   : > { %1649 = vst [vmem:[%s2524_s11 + $0x30] sm:$0xff] %v1557_v60   ;;  %v983_v3 = vmul.f32 %v1906_v8, %v2479_v25  ;;  %v1908_v4 = vpop.eup %1907 }
 0x206   : > { %v984_v7 = vmul.f32 %v1908_v4, %v2484_v31 }
 0x207   : > { %v1597_v10 = vpack.c.bf16 %v983_v3, %v982_v54 }
 0x208   : > { %v1910_v19 = vpop.eup %1909 }
 0x209   : > { %1656 = vst [vmem:[%s2530_s12 + $0x30] sm:$0xff] %v1597_v10   ;;  %v985_v52 = vmul.f32 %v1910_v19, %v2494_v41  ;;  %v1912_v13 = vpop.eup %1911 }
 0x20a   : > { %v888_v31 = vmul.f32 %v1912_v13, %v2487_v34 }
 0x20b   : > { %v1602_v18 = vpack.c.bf16 %v985_v52, %v984_v7 }
 0x20c   : > { %v1914_v25 = vpop.eup %1913 }
 0x20d   : > { %1657 = vst [vmem:[%s2530_s12 + $0x38] sm:$0xff] %v1602_v18   ;;  %v889_v41 = vmul.f32 %v1914_v25, %v2498_v46  ;;  %s1973_s12 = sshll.u32 %s2134_s8, 4  ;;  %s1974_s12 = int_to_ptr.vmem [resolvable:$false] %s1973_s12 }
 0x20e   : > { %s1975_s5 = scalar_lea.vmem %s1974_s12, 2048  ;;  %p1976_p0 = scmp.lt.s32.totalorder %s2584_s6, %s1974_s12 }
 0x20f   : > { %p1977_p3 = scmp.lt.s32.totalorder %s1975_s5, %s1969_s15 }
 0x211   : > { %p1978_p5 = por %p1977_p3, %p1976_p0 }
 0x213   : > { %p1979_p2 = pnand %p1978_p5, %p1972_p8 }
 0x215   : > { %1982 = shalt.err (!%p1979_p2)
}
 0x216   : > { %s1983_s29 = scalar_lea.hbm %s2582_s26, 1024  ;;  %s1987_s7 = scalar_lea.hbm %s2710_s4, 4096 }
 0x217   : > { %p1984_p6 = scmp.ne.s32.totalorder %s2582_s26, %s1983_s29  ;;  %p1988_p11 = scmp.lt.s32.totalorder %s2582_s26, %s2710_s4 }
 0x218   : > { %p1989_p10 = scmp.lt.s32.totalorder %s1987_s7, %s1983_s29 }
 0x219   : > { %p1985_p7 = pnand %p1984_p6, %p2255_p12 }
 0x21a   : > { %p1990_p13 = por %p1989_p10, %p1988_p11 }
 0x21b   : > { %p1986_p9 = pneg %p1985_p7 }
 0x21d   : > { %p1991_p1 = pnand %p1990_p13, %p1986_p9 }
 0x21f   : > { %1994 = shalt.err (!%p1991_p1)
}
 0x220   : > { %s2135_s15 = smov 64   ;;  %s2136_s8 = smov 4   ;;  %v1562_v34 = vpack.c.bf16 %v889_v41, %v888_v31 }
 0x221   : > { %1720 = dma.vmem_to_hbm [thread:$0]  (%p2255_p12), %s2584_s6, 1024, %s2582_s26, %s2601_s9, %s2135_s15, %s2135_s15, %s2136_s8  }
 0x222   : > { %s1995_s12 = scalar_lea.vmem %s2572_s27, 1024  ;;  %s2137_s5 = smov [#allocation10]  }
 0x223   : > { %p1996_p4 = scmp.ne.s32.totalorder %s2572_s27, %s1995_s12  ;;  %s1999_s29 = sshll.u32 %s2137_s5, 4  ;;  %s2000_s29 = int_to_ptr.vmem [resolvable:$false] %s1999_s29 }
 0x224   : > { %s2001_s21 = scalar_lea.vmem %s2000_s29, 2048  ;;  %p2002_p3 = scmp.lt.s32.totalorder %s2572_s27, %s2000_s29 }
 0x225   : > { %p1997_p8 = pnand %p1996_p4, %p2255_p12  ;;  %p2003_p5 = scmp.lt.s32.totalorder %s2001_s21, %s1995_s12 }
 0x227   : > { %p1998_p0 = pneg %p1997_p8  ;;  %p2004_p2 = por %p2003_p5, %p2002_p3 }
 0x229   : > { %p2005_p6 = pnand %p2004_p2, %p1998_p0 }
 0x22b   : > { %2008 = shalt.err (!%p2005_p6)
}
 0x22c   : > { %s2009_s6 = scalar_lea.hbm %s2589_s1, 1024  ;;  %s2013_s7 = scalar_lea.hbm %s2734_s10, 4096 }
 0x22d   : > { %p2010_p7 = scmp.ne.s32.totalorder %s2589_s1, %s2009_s6  ;;  %p2014_p10 = scmp.lt.s32.totalorder %s2589_s1, %s2734_s10 }
 0x22e   : > { %p2015_p13 = scmp.lt.s32.totalorder %s2013_s7, %s2009_s6 }
 0x22f   : > { %p2011_p9 = pnand %p2010_p7, %p2255_p12 }
 0x230   : > { %p2016_p1 = por %p2015_p13, %p2014_p10 }
 0x231   : > { %p2012_p11 = pneg %p2011_p9 }
 0x233   : > { %p2017_p4 = pnand %p2016_p1, %p2012_p11 }
 0x235   : > { %2020 = shalt.err (!%p2017_p4)
}
 0x236   : > { %1721 = dma.vmem_to_hbm [thread:$0]  (%p2255_p12), %s2572_s27, 1024, %s2589_s1, %s2601_s9, %s2135_s15, %s2135_s15, %s2136_s8  }
 0x237   : > { %1650 = vst [vmem:[%s2524_s11 + $0x38] sm:$0xff] %v1562_v34   ;;  %s1147_s12 = scalar_lea.sflag [#allocation4], %s2292_s18  ;;  %s2021_s5 = scalar_lea.vmem %s2599_s22, 1024 }
 0x238   : > { %p2022_p8 = scmp.ne.s32.totalorder %s2599_s22, %s2021_s5  ;;  %s2138_s29 = smov [#allocation7]  }
 0x239   : > { %s2025_s21 = sshll.u32 %s2138_s29, 4  ;;  %s2026_s21 = int_to_ptr.vmem [resolvable:$false] %s2025_s21 }
 0x23a   : > { %p2023_p0 = pnand %p2022_p8, %p2255_p12  ;;  %s2027_s6 = scalar_lea.vmem %s2026_s21, 2048 }
 0x23b   : > { %p2028_p5 = scmp.lt.s32.totalorder %s2599_s22, %s2026_s21  ;;  %p2029_p2 = scmp.lt.s32.totalorder %s2027_s6, %s2021_s5 }
 0x23c   : > { %p2024_p3 = pneg %p2023_p0 }
 0x23d   : > { %p2030_p6 = por %p2029_p2, %p2028_p5 }
 0x23f   : > { %p2031_p7 = pnand %p2030_p6, %p2024_p3 }
 0x241   : > { %2034 = shalt.err (!%p2031_p7)
}
 0x242   : > { %s2035_s11 = scalar_lea.hbm %s2597_s16, 1024  ;;  %s2039_s1 = scalar_lea.hbm %s2735_s30, 4096 }
 0x243   : > { %p2036_p9 = scmp.ne.s32.totalorder %s2597_s16, %s2035_s11  ;;  %p2040_p13 = scmp.lt.s32.totalorder %s2597_s16, %s2735_s30 }
 0x244   : > { %p2041_p1 = scmp.lt.s32.totalorder %s2039_s1, %s2035_s11 }
 0x245   : > { %p2037_p11 = pnand %p2036_p9, %p2255_p12 }
 0x246   : > { %p2042_p4 = por %p2041_p1, %p2040_p13 }
 0x247   : > { %p2038_p10 = pneg %p2037_p11 }
 0x249   : > { %p2043_p8 = pnand %p2042_p4, %p2038_p10 }
 0x24b   : > { %2046 = shalt.err (!%p2043_p8)
}
 0x24c   : > { %1719 = dma.vmem_to_hbm [thread:$0]  (%p2255_p12), %s2599_s22, 1024, %s2597_s16, %s1147_s12, %s2135_s15, %s2135_s15, %s2136_s8  }
 0x24d PF: > { %s2736_s23 = sld [smem:[#allocation15_spill]]  ;;  %p1746_p0 = scmp.ge.s32.totalorder %s2125_s25, 2 }
 0x24e   : > { %s2737_s7 = sld [smem:[#allocation17_spill]] }
 0x253   : > { %s1223_s3 = sand.u32 1, %s2736_s23  }
 0x254   : > { %p2738_p3 = scmp.ne.s32.totalorder %s2737_s7, 0  ;;  %s1224_s28 = scalar_lea.sflag [#allocation4], %s1223_s3 }
 0x256   : > { %p1734_p5 = pnand %p1746_p0, %p2738_p3 }
 0x258   : > { %p1735_p2 = pneg %p1734_p5 }
 0x25a   : > { %2088 = dma.done.wait (%p1735_p2), %s1224_s28, 1024  }
 0x25b   : > { %2090 = vsyncadd (%p1735_p2), %s1224_s28, 4294966272  ;;  %s2739_s17 = sadd.s32 4294967294, %s2125_s25  }
 0x25c   : > { %s1232_s5 = sand.u32 1, %s2739_s17  }
 0x25d   : > { %s1233_s29 = scalar_lea.sflag [#allocation9], %s1232_s5 }
 0x25e   : > { %2092 = dma.done.wait (%p1735_p2), %s1233_s29, 2048  }
 0x25f   : > { %2094 = vsyncadd (%p1735_p2), %s1233_s29, 4294965248  ;;  %s26_s25 = sadd.s32 1, %s2125_s25   ;;  %s2740_s21 = sld [smem:[#allocation16_spill]] }
 0x260   : > { %p23_p12 = scmp.ge.s32.totalorder %s26_s25, 6   ;;  %s2741_s23 = sld [smem:[#allocation18_spill]] }
 0x261   : > { %s2742_s18 = smov %s2101_s19  ;;  %s2743_s19 = smov %s2105_s20 }
 0x262   : > { %s2744_s20 = smov %s2272_s13  ;;  %s2745_s22 = smov %s2121_s24 }
 0x263   : > { %s2746_s24 = smov %s2752_s14  ;;  %25 = sbr.rel (!%p23_p12) target bundleno = 14 (0xe), region = 113 }
 0x268   :  { %1247 = vsyncpa [#allocation3], 1 }
 0x269   :  { %1249 = vsyncpa [#allocation3 + $0x1], 1 }
 0x26a   :  { %1250 = vsyncpa [#allocation6], 1 }
 0x26b   :  { %1251 = vsyncpa [#allocation4], 1 }
 0x26c   :  { %1253 = vsyncpa [#allocation4 + $0x1], 1 }
 0x26d   :  { %1254 = vsyncpa [#allocation9], 1 }
 0x26e   :  { %1256 = vsyncpa [#allocation9 + $0x1], 1 }

</bundles_post_ra>
